<compile_context>
chip_gen: v6e
topology: v6e:2x2x1
jax: 0.10.0
libtpu: 0.0.40
codegen_flags: <defaults>
</compile_context>

<pallas_src>
import jax
import jax.numpy as jnp
from jax.experimental import pallas as pl
from jax.experimental.pallas import tpu as pltpu


def _round_up(x, m):
    return ((x + m - 1) // m) * m


def _vmem_capacity_bytes():
    try:
        info = pltpu.get_tpu_info()
        cap = getattr(info, "vmem_capacity_bytes", None)
        if cap:
            return int(cap)
    except Exception:
        pass
    return 64 * 1024 * 1024          # conservative (v7x-sized) fallback


def _pick_row_tile(ho, bytes_for, batch, budget, max_rt=64):
    """Largest row tile (multiple of 8, or Ho itself) fitting the VMEM budget."""
    cands = []
    if ho <= max_rt:
        cands.append(ho)                                   # single row tile
    cands += [c for c in range(max_rt, 7, -8) if c < ho]   # 64, 56, ..., 8
    fitting = [c for c in cands if bytes_for(c) <= budget]
    if not fitting:
        fitting = [min(8, ho)]
    if batch == 1:                                         # v7x: 2 TensorCores
        multi = [c for c in fitting if -(-ho // c) >= 2]
        if multi:
            return multi[0]
    return fitting[0]


def _make_downsample_kernel(row_tile, wo_k):
    """One grid step = one (batch, row-tile) block: 3 big GEMMs + 1 halo GEMM."""

    def kernel(xe_ref, xe_halo_ref, xo_ref, w_ref, b_ref, o_ref):
        # xe_ref / xo_ref : (1, row_tile*wo_k, 3*Cin) bf16  -- kw-im2col rows,
        #                   even / odd padded input rows of this tile.
        # xe_halo_ref     : (1, wo_k, 3*Cin)  bf16  -- first even row of next tile.
        # w_ref           : (3, 3*Cin, Cout)  bf16   b_ref: (1, Cout) f32
        # o_ref           : (1, row_tile*wo_k, Cout)
        cout = o_ref.shape[-1]
        lhs_e = xe_ref[0]                      # (rt*wo_k, 3C)
        lhs_o = xo_ref[0]

        # Bias folded into the f32 accumulator init; broadcast hoisted.
        acc = jnp.broadcast_to(b_ref[...], (row_tile * wo_k, cout))
        acc = acc + jnp.dot(lhs_e, w_ref[0], preferred_element_type=jnp.float32)
        acc = acc + jnp.dot(lhs_o, w_ref[1], preferred_element_type=jnp.float32)

        # kh == 2: output row t uses even input row t+1 -> shift the GEMM result
        # by one row-block (aligned f32 slice) and append the halo contribution.
        c_all = jnp.dot(lhs_e, w_ref[2], preferred_element_type=jnp.float32)
        c_halo = jnp.dot(xe_halo_ref[0], w_ref[2],
                         preferred_element_type=jnp.float32)
        if row_tile > 1:
            kh2 = jnp.concatenate([c_all[wo_k:], c_halo], axis=0)
        else:
            kh2 = c_halo

        o_ref[0] = (acc + kh2).astype(o_ref.dtype)

    return kernel


def downsample_forward(x_nchw, weight_oihw, bias, *, compute_dtype=jnp.bfloat16,
                       max_row_tile=64):
    """Forward pass of Downsample(with_conv=True). Input/output are NCHW."""
    N, C, H, W = x_nchw.shape
    Cout = weight_oihw.shape[0]
    out_dtype = x_nchw.dtype

    # PyTorch output size for pad=(0,1,0,1), kernel=3, stride=2, no conv padding.
    Ho = (H - 2) // 2 + 1
    Wo = (W - 2) // 2 + 1

    # Pad output width to a sublane-friendly multiple of 8 (extra cols read
    # zeros and are cropped).  K of every GEMM is 3*C after folding the kw taps.
    Wo_k = max(8, _round_up(Wo, 8))
    C3 = 3 * C

    # ---- VMEM-aware row-tile choice (weights + bias + halo + both buffers). ----
    in_item = jnp.dtype(compute_dtype).itemsize
    out_item = jnp.dtype(out_dtype).itemsize
    vmem_limit = min(int(0.75 * _vmem_capacity_bytes()), 96 * 1024 * 1024)

    def bytes_for(rt):
        main = rt * Wo_k * C3 * in_item                 # one parity slab
        halo = Wo_k * C3 * in_item
        outb = rt * Wo_k * Cout * out_item
        wts = 3 * C3 * Cout * in_item + Cout * 4        # weights + f32 bias
        return 2 * (2 * main + halo + outb) + 2 * wts   # double buffered

    row_tile = _pick_row_tile(Ho, bytes_for, N, int(0.6 * vmem_limit), max_row_tile)
    n_row_tiles = -(-Ho // row_tile)                    # cdiv; no divisibility req.
    Ho_pad = row_tile * n_row_tiles

    # ---- Wrapper layout: bf16 cast FIRST (half the bytes for the transpose/pad),
    # NCHW->NHWC, zero pad, kw-im2col (3C lanes), even/odd split over input rows.
    x_bf = x_nchw.astype(compute_dtype)
    x_nhwc = jnp.transpose(x_bf, (0, 2, 3, 1))
    rows_needed = 2 * Ho_pad + 1
    cols_needed = 2 * Wo_k + 1
    x_pad = jnp.pad(x_nhwc,
                    ((0, 0), (0, rows_needed - H), (0, cols_needed - W), (0, 0)))
    xe0 = x_pad[:, :, 0:2 * Wo_k:2, :]                  # cols 2j      (kw = 0)
    xod = x_pad[:, :, 1:2 * Wo_k:2, :]                  # cols 2j + 1  (kw = 1)
    xe1 = x_pad[:, :, 2:2 * Wo_k + 1:2, :]              # cols 2j + 2  (kw = 2)
    x_patch = jnp.concatenate([xe0, xod, xe1], axis=-1)  # (N, rows, Wo_k, 3C)
    x_pe = x_patch[:, 0::2].reshape(N, (Ho_pad + 1) * Wo_k, C3)   # even rows
    x_po = x_patch[:, 1::2].reshape(N, Ho_pad * Wo_k, C3)         # odd rows

    # PyTorch weight (Cout, Cin, 3, 3) -> (kh, kw*Cin, Cout) matching patch lanes.
    w3 = jnp.transpose(weight_oihw, (2, 3, 1, 0)).reshape(3, C3, Cout)
    w3 = w3.astype(compute_dtype)
    b_row = bias.reshape(1, Cout).astype(jnp.float32)

    block_rows = row_tile * Wo_k
    kernel = _make_downsample_kernel(row_tile, Wo_k)

    cost = pl.CostEstimate(
        flops=2 * N * Ho_pad * Wo_k * 9 * C * Cout,
        transcendentals=0,
        bytes_accessed=int((x_pe.size + x_po.size + w3.size) * in_item
                           + N * Ho_pad * Wo_k * Cout * out_item),
    )

    out_flat = pl.pallas_call(
        kernel,
        out_shape=jax.ShapeDtypeStruct((N, Ho_pad * Wo_k, Cout), out_dtype),
        grid_spec=pltpu.PrefetchScalarGridSpec(
            num_scalar_prefetch=0,
            grid=(N, n_row_tiles),
            in_specs=[
                # even-row slab (kh = 0 and kh = 2)
                pl.BlockSpec((1, block_rows, C3), lambda n, i: (n, i, 0)),
                # 1-row halo: first even row of the next tile (kh = 2, last row)
                pl.BlockSpec((1, Wo_k, C3),
                             lambda n, i: (n, row_tile * (i + 1), 0)),
                # odd-row slab (kh = 1)
                pl.BlockSpec((1, block_rows, C3), lambda n, i: (n, i, 0)),
                # weights / bias: constant index_map -> DMA'd once, stay resident
                pl.BlockSpec((3, C3, Cout), lambda n, i: (0, 0, 0)),
                pl.BlockSpec((1, Cout), lambda n, i: (0, 0)),
            ],
            out_specs=pl.BlockSpec((1, block_rows, Cout), lambda n, i: (n, i, 0)),
        ),
        compiler_params=pltpu.CompilerParams(
            dimension_semantics=("parallel", "parallel"),
            vmem_limit_bytes=vmem_limit,
        ),
        cost_estimate=cost,
    )(x_pe, x_pe, x_po, w3, b_row)

    out = out_flat.reshape(N, Ho_pad, Wo_k, Cout)[:, :Ho, :Wo, :]
    return jnp.transpose(out, (0, 3, 1, 2))              # back to NCHW


if __name__ == "__main__":
    # Small deterministic example consistent with the module: in_channels=4.
    N, C, H, W = 2, 4, 16, 16
    key = jax.random.PRNGKey(0)
    kx, kw_, kb = jax.random.split(key, 3)

    x = jax.random.normal(kx, (N, C, H, W), dtype=jnp.float32)
    # Conv2d(4, 4, kernel_size=3): weight (4, 4, 3, 3), bias (4,)
    weight = jax.random.normal(kw_, (C, C, 3, 3), dtype=jnp.float32) * 0.1
    bias = jax.random.normal(kb, (C,), dtype=jnp.float32) * 0.1

    fwd = jax.jit(downsample_forward)
    out = jax.block_until_ready(fwd(x, weight, bias))

    # Reference: same pad-(0,1,0,1) + stride-2 valid conv + bias, with the same
    # bf16 inputs / f32 accumulation as the kernel's compute path.
    ref = jax.lax.conv_general_dilated(
        x.astype(jnp.bfloat16), weight.astype(jnp.bfloat16),
        window_strides=(2, 2),
        padding=[(0, 1), (0, 1)],
        dimension_numbers=("NCHW", "OIHW", "NCHW"),
        preferred_element_type=jnp.float32,
    ).astype(x.dtype) + bias.reshape(1, C, 1, 1)

    Ho = (H - 2) // 2 + 1
    Wo = (W - 2) // 2 + 1
    assert out.shape == ref.shape == (N, C, Ho, Wo)
    assert jnp.allclose(out, ref, atol=1e-2, rtol=1e-2), "mismatch vs reference conv"

    print("KERNEL_OK")
</pallas_src>

<mosaic_0001>
module attributes {stable_mosaic.version = 11 : i64} {
  func.func @kernel(%arg0: i32, %arg1: i32, %arg2: memref<1x64x12xbf16, #tpu.memory_space<vmem>>, %arg3: memref<1x8x12xbf16, #tpu.memory_space<vmem>>, %arg4: memref<1x64x12xbf16, #tpu.memory_space<vmem>>, %arg5: memref<3x12x4xbf16, #tpu.memory_space<vmem>>, %arg6: memref<1x4xf32, #tpu.memory_space<vmem>>, %arg7: memref<1x64x4xf32, #tpu.memory_space<vmem>>) attributes {dimension_semantics = [#tpu.dimension_semantics<parallel>, #tpu.dimension_semantics<parallel>], iteration_bounds = array<i64: 2, 1>, scalar_prefetch = 0 : i64, scratch_operands = 0 : i64, tpu.core_type = #tpu.core_type<tc>, window_params = [{transform_indices = @transform_0, window_bounds = array<i64: 1, 64, 12>}, {transform_indices = @transform_1, window_bounds = array<i64: 1, 8, 12>}, {transform_indices = @transform_2, window_bounds = array<i64: 1, 64, 12>}, {pipeline_mode = #tpu.pipeline_mode<synchronous>, transform_indices = @transform_3, window_bounds = array<i64: 3, 12, 4>}, {pipeline_mode = #tpu.pipeline_mode<synchronous>, transform_indices = @transform_4, window_bounds = array<i64: 1, 4>}, {transform_indices = @transform_5, window_bounds = array<i64: 1, 64, 4>}]} {
    %c0 = arith.constant 0 : index
    %c0_0 = arith.constant 0 : index
    %c0_1 = arith.constant 0 : index
    %0 = vector.load %arg2[%c0, %c0_0, %c0_1] : memref<1x64x12xbf16, #tpu.memory_space<vmem>>, vector<1x64x12xbf16>
    %1 = vector.shape_cast %0 : vector<1x64x12xbf16> to vector<64x12xbf16>
    %c0_2 = arith.constant 0 : index
    %c0_3 = arith.constant 0 : index
    %c0_4 = arith.constant 0 : index
    %2 = vector.load %arg4[%c0_2, %c0_3, %c0_4] : memref<1x64x12xbf16, #tpu.memory_space<vmem>>, vector<1x64x12xbf16>
    %3 = vector.shape_cast %2 : vector<1x64x12xbf16> to vector<64x12xbf16>
    %c0_5 = arith.constant 0 : index
    %c0_6 = arith.constant 0 : index
    %4 = vector.load %arg6[%c0_5, %c0_6] : memref<1x4xf32, #tpu.memory_space<vmem>>, vector<1x4xf32>
    %5 = vector.shape_cast %4 : vector<1x4xf32> to vector<1x4xf32>
    %6 = vector.broadcast %5 : vector<1x4xf32> to vector<64x4xf32>
    %c0_7 = arith.constant 0 : index
    %c0_8 = arith.constant 0 : index
    %c0_9 = arith.constant 0 : index
    %7 = vector.load %arg5[%c0_7, %c0_8, %c0_9] : memref<3x12x4xbf16, #tpu.memory_space<vmem>>, vector<1x12x4xbf16>
    %8 = vector.shape_cast %7 : vector<1x12x4xbf16> to vector<12x4xbf16>
    %cst = arith.constant dense<0.000000e+00> : vector<64x4xf32>
    %9 = tpu.matmul %1, %8, %cst {dimension_numbers = #tpu.dot_dimension_numbers<[1], [0], [0], [1], [0, 0, 1, 1], [], []>} : vector<64x12xbf16>, vector<12x4xbf16>, vector<64x4xf32> -> vector<64x4xf32>
    %10 = arith.addf %6, %9 : vector<64x4xf32>
    %c1 = arith.constant 1 : index
    %c0_10 = arith.constant 0 : index
    %c0_11 = arith.constant 0 : index
    %11 = vector.load %arg5[%c1, %c0_10, %c0_11] : memref<3x12x4xbf16, #tpu.memory_space<vmem>>, vector<1x12x4xbf16>
    %12 = vector.shape_cast %11 : vector<1x12x4xbf16> to vector<12x4xbf16>
    %cst_12 = arith.constant dense<0.000000e+00> : vector<64x4xf32>
    %13 = tpu.matmul %3, %12, %cst_12 {dimension_numbers = #tpu.dot_dimension_numbers<[1], [0], [0], [1], [0, 0, 1, 1], [], []>} : vector<64x12xbf16>, vector<12x4xbf16>, vector<64x4xf32> -> vector<64x4xf32>
    %14 = arith.addf %10, %13 : vector<64x4xf32>
    %c2 = arith.constant 2 : index
    %c0_13 = arith.constant 0 : index
    %c0_14 = arith.constant 0 : index
    %15 = vector.load %arg5[%c2, %c0_13, %c0_14] : memref<3x12x4xbf16, #tpu.memory_space<vmem>>, vector<1x12x4xbf16>
    %16 = vector.shape_cast %15 : vector<1x12x4xbf16> to vector<12x4xbf16>
    %cst_15 = arith.constant dense<0.000000e+00> : vector<64x4xf32>
    %17 = tpu.matmul %1, %16, %cst_15 {dimension_numbers = #tpu.dot_dimension_numbers<[1], [0], [0], [1], [0, 0, 1, 1], [], []>} : vector<64x12xbf16>, vector<12x4xbf16>, vector<64x4xf32> -> vector<64x4xf32>
    %c0_16 = arith.constant 0 : index
    %c0_17 = arith.constant 0 : index
    %c0_18 = arith.constant 0 : index
    %18 = vector.load %arg3[%c0_16, %c0_17, %c0_18] : memref<1x8x12xbf16, #tpu.memory_space<vmem>>, vector<1x8x12xbf16>
    %19 = vector.shape_cast %18 : vector<1x8x12xbf16> to vector<8x12xbf16>
    %c2_19 = arith.constant 2 : index
    %c0_20 = arith.constant 0 : index
    %c0_21 = arith.constant 0 : index
    %20 = vector.load %arg5[%c2_19, %c0_20, %c0_21] : memref<3x12x4xbf16, #tpu.memory_space<vmem>>, vector<1x12x4xbf16>
    %21 = vector.shape_cast %20 : vector<1x12x4xbf16> to vector<12x4xbf16>
    %cst_22 = arith.constant dense<0.000000e+00> : vector<8x4xf32>
    %22 = tpu.matmul %19, %21, %cst_22 {dimension_numbers = #tpu.dot_dimension_numbers<[1], [0], [0], [1], [0, 0, 1, 1], [], []>} : vector<8x12xbf16>, vector<12x4xbf16>, vector<8x4xf32> -> vector<8x4xf32>
    %23 = vector.extract_strided_slice %17 {offsets = [8, 0], sizes = [56, 4], strides = [1, 1]} : vector<64x4xf32> to vector<56x4xf32>
    %24 = tpu.concatenate %23, %22 in 0 : vector<56x4xf32>, vector<8x4xf32> -> vector<64x4xf32>
    %25 = arith.addf %14, %24 : vector<64x4xf32>
    %c0_23 = arith.constant 0 : index
    %c0_24 = arith.constant 0 : index
    %c0_25 = arith.constant 0 : index
    %26 = vector.load %arg7[%c0_23, %c0_24, %c0_25] : memref<1x64x4xf32, #tpu.memory_space<vmem>>, vector<1x64x4xf32>
    %27 = vector.shape_cast %26 : vector<1x64x4xf32> to vector<64x4xf32>
    %28 = vector.shape_cast %25 : vector<64x4xf32> to vector<1x64x4xf32>
    tpu.vector_store %arg7[%c0_23, %c0_24, %c0_25], %28 {strides = array<i32>} : memref<1x64x4xf32, #tpu.memory_space<vmem>>, vector<1x64x4xf32>,
    return
  }
  func.func @transform_0(%arg0: i32, %arg1: i32) -> (i32, i32, i32) {
    %c0_i32 = arith.constant 0 : i32
    %c0_i32_0 = arith.constant 0 : i32
    return %arg0, %arg1, %c0_i32 : i32, i32, i32
  }
  func.func @transform_1(%arg0: i32, %arg1: i32) -> (i32, i32, i32) {
    %c1_i32 = arith.constant 1 : i32
    %0 = arith.addi %arg1, %c1_i32 : i32
    %c8_i32 = arith.constant 8 : i32
    %1 = arith.muli %c8_i32, %0 : i32
    %c0_i32 = arith.constant 0 : i32
    %c0_i32_0 = arith.constant 0 : i32
    return %arg0, %1, %c0_i32 : i32, i32, i32
  }
  func.func @transform_2(%arg0: i32, %arg1: i32) -> (i32, i32, i32) {
    %c0_i32 = arith.constant 0 : i32
    %c0_i32_0 = arith.constant 0 : i32
    return %arg0, %arg1, %c0_i32 : i32, i32, i32
  }
  func.func @transform_3(%arg0: i32, %arg1: i32) -> (i32, i32, i32) {
    %c0_i32 = arith.constant 0 : i32
    %c0_i32_0 = arith.constant 0 : i32
    %c0_i32_1 = arith.constant 0 : i32
    %c0_i32_2 = arith.constant 0 : i32
    return %c0_i32, %c0_i32_0, %c0_i32_1 : i32, i32, i32
  }
  func.func @transform_4(%arg0: i32, %arg1: i32) -> (i32, i32) {
    %c0_i32 = arith.constant 0 : i32
    %c0_i32_0 = arith.constant 0 : i32
    %c0_i32_1 = arith.constant 0 : i32
    return %c0_i32, %c0_i32_0 : i32, i32
  }
  func.func @transform_5(%arg0: i32, %arg1: i32) -> (i32, i32, i32) {
    %c0_i32 = arith.constant 0 : i32
    %c0_i32_0 = arith.constant 0 : i32
    return %arg0, %arg1, %c0_i32 : i32, i32, i32
  }
}

</mosaic_0001>

<bundles_post_ra>
// kernel: downsample_forward.1
= control target key start
LH: loop header
LB: loop body
LE: loop exit
PB: predicated region body
PF: predicated region fallthrough
CT: control target
= control target key end

     0   :  { %s1079_s18 = smov 0   ;;  %s1081_s19 = smov 0   ;;  %s1172_s0 = inlined_call_operand.vmem [shape: bf16[2,72,12], index: 0, kind: input, shape index: {}, may-alias: {0,1}]   ;;  %s1173_s1 = inlined_call_operand.vmem [shape: bf16[2,72,12], index: 1, kind: input, shape index: {}, may-alias: {0,1}]   ;;  %s1174_s2 = inlined_call_operand.vmem [shape: bf16[2,64,12], index: 2, kind: input, shape index: {}]   ;;  %s1175_s3 = inlined_call_operand.vmem [shape: bf16[3,12,4], index: 3, kind: input, shape index: {}]   ;;  %s1176_s4 = inlined_call_operand.vmem [shape: f32[1,4], index: 4, kind: input, shape index: {}]   ;;  %s1177_s5 = inlined_call_operand.vmem [shape: f32[2,64,4], index: 5, kind: output, shape index: {}]  }
   0x1   :  { %s1083_s20 = smov 0  }
   0x2 LB: > { %s27_s21 = sadd.s32 1, %s1041_s19  ;;  %p885_p0 = scmp.ge.s32.totalorder %s1045_s20, 1  ;;  %s1045_s20 = sphi %s1083_s20, %s15_s20   ;;  %s1041_s19 = sphi %s1081_s19, %s1179_s19   ;;  %s1037_s18 = sphi %s1079_s18, %s1178_s18  }
   0x3   : > { %p29_p1 = scmp.ge.s32.totalorder %s27_s21, 2  ;;  %p256_p2 = scmp.lt.s32.totalorder %s1045_s20, 3 }
   0x5   : > { %s1181_s21 = smov (%p29_p1, %s27_s21), 0  ;;  %p257_p3 = pnand %p885_p0, %p256_p2 }
   0x6   : > { %p320_p4 = scmp.lt.s32.totalorder (!%p257_p3), %s1037_s18, 1 }
   0x7   : > { %260 = sbr.rel (%p257_p3) target bundleno = 244 (0xf4), region = 40 }
   0xc   : > { %v1012_v0 = vld [vmem:[%s1175_s3] sm:$0x3f]   ;;  %vm429_vm0 = vcmask 1045504   ;;  %v1013_v2 = vld [vmem:[%s1175_s3 + $0x8] sm:$0x3f]   ;;  %s1183_s18 = smov (!%p320_p4, %s1037_s18), 1 }
   0xd   : > { %980 = vmatprep.subr.msk.bf16.mxu0 %vm429_vm0, %v1012_v0  ;;  %v431_v1 = vsel %vm429_vm0, %v1012_v0, 0  ;;  %v1016_v3 = vld [vmem:[%s1175_s3 + $0x10] sm:$0x3f]   ;;  %981 = vmatprep.subr.msk.bf16.mxu1 %vm429_vm0, %v1013_v2  ;;  %v547_v4 = vsel %vm429_vm0, %v1013_v2, 0  ;;  %s983_s28 = smul.u32 36, %s1183_s18  ;;  %s925_s29 = sshll.u32 %s1183_s18, 5 }
   0xe   : > { %945 = vmatpush3.bf16.msra.mxu0 %v431_v1  ;;  %955 = vmatpush3.bf16.msra.mxu1 %v547_v4  ;;  %vm416_vm1 = vcmask 97280   ;;  %s353_s7 = scalar_lea.vmem %s1174_s2, %s925_s29  ;;  %v1047_v5 = vmov 0.0   ;;  %v631_v9 = vsel %vm429_vm0, %v1016_v3, 0  ;;  %vm1048_vm2 = vmmov 0   ;;  %v892_v26 = vld [vmem:[%s1176_s4] ss:$0 sm:$0xff] }
   0xf   : > { %982 = vmatprep.subr.msk.bf16.mxu0 %vm429_vm0, %v1016_v3  ;;  %974 = vmatprep.subr.bf16.mxu1 %v1047_v5  ;;  %s327_s10 = scalar_lea.vmem %s1172_s0, %s983_s28  ;;  %v1015_v6 = vld [vmem:[%s353_s7] sm:$0xff]   ;;  %v1018_v10 = vld [vmem:[%s353_s7 + $0x8] sm:$0xff]   ;;  %v1020_v12 = vld [vmem:[%s353_s7 + $0x10] sm:$0xff]   ;;  %s924_s11 = sadd.s32 32, %s983_s28  ;;  %vm749_vm3 = vcmask 31744  }
  0x10   : > { %v1014_v7 = vld [vmem:[%s327_s10] sm:$0xff]   ;;  %956 = vmatprep.mubr.msk.bf16.mxu1 %vm416_vm1, %v1015_v6  ;;  %v1017_v8 = vld [vmem:[%s327_s10 + $0x8] sm:$0xff]   ;;  %v1019_v11 = vld [vmem:[%s327_s10 + $0x10] sm:$0xff]   ;;  %s342_s14 = scalar_lea.vmem %s1173_s1, %s924_s11  ;;  %s926_s17 = sshll.u32 %s1183_s18, 6 }
  0x11   : > { %946 = vmatprep.mubr.msk.bf16.mxu0 %vm416_vm1, %v1014_v7  ;;  %957 = vmatmul.mubr.msk.bf16.vlgmr.msra.gmra.mxu1 %vm416_vm1, %v1018_v10  ;;  %v1021_v13 = vld [vmem:[%s327_s10 + $0x18] sm:$0xff]   ;;  %v697_v15 = vld [vmem:[%s342_s14] sm:$0xf]  ;;  %s1145_s24 = scalar_lea.vmem %s1177_s5, %s926_s17 }
  0x12   : > { %947 = vmatmul.mubr.msk.bf16.vlgmr.msra.gmra.mxu0 %vm416_vm1, %v1017_v8  ;;  %975 = vmatpush3.bf16.msra.mxu1 %v631_v9  ;;  %v1022_v14 = vld [vmem:[%s353_s7 + $0x18] sm:$0xff]  }
  0x13   : > { %965 = vmatpush3.bf16.msra.mxu0 %v631_v9  ;;  %950 = vmatprep.mubr.msk.bf16.mxu0 %vm416_vm1, %v1019_v11 }
  0x14   : > { %960 = vmatprep.mubr.msk.bf16.mxu1 %vm416_vm1, %v1020_v12 }
  0x19   : > { %961 = vmatmul.mubr.msk.bf16.gmra.mxu1 %vm416_vm1, %v1022_v14 }
  0x1a   : > { %951 = vmatmul.mubr.msk.bf16.gmra.mxu0 %vm416_vm1, %v1021_v13  ;;  %976 = vmatprep.mubr.msk.bf16.mxu1 %vm1048_vm2, %v1047_v5 }
  0x1b   : > { %966 = vmatprep.mubr.msk.bf16.mxu0 %vm416_vm1, %v1014_v7 }
  0x21   : > { %977 = vmatmul.mubr.msk.bf16.vlgmr.msra.gmra.mxu1 %vm416_vm1, %v697_v15 }
  0x22   : > { %967 = vmatmul.mubr.msk.bf16.vlgmr.msra.gmra.mxu0 %vm416_vm1, %v1017_v8 }
  0x23   : > { %970 = vmatprep.mubr.msk.bf16.mxu0 %vm416_vm1, %v1019_v11 }
  0x2a   : > { %971 = vmatmul.mubr.msk.bf16.gmra.mxu0 %vm416_vm1, %v1021_v13 }
  0xd1   : > { %v958_v17 = vpop.f32.mrf.mxu1 }
  0xd2   : > { %v948_v16 = vpop.f32.mrf.mxu0 }
  0xd3   : > { %v583_v19 = vpop.f32.mrf.mxu1  ;;  %v500_v34 = vadd.f32 %v948_v16, %v892_v26 }
  0xd4   : > { %v467_v18 = vpop.f32.mrf.mxu0 }
  0xd5   : > { %v959_v21 = vpop.f32.mrf.mxu1  ;;  %v498_v39 = vadd.f32 %v892_v26, %v467_v18  ;;  %v616_v44 = vadd.f32 %v958_v17, %v500_v34 }
  0xd6   : > { %v949_v20 = vpop.f32.mrf.mxu0 }
  0xd7   : > { %v586_v23 = vpop.f32.mrf.mxu1  ;;  %v614_v48 = vadd.f32 %v583_v19, %v498_v39  ;;  %v501_v49 = vadd.f32 %v949_v20, %v892_v26 }
  0xd8   : > { %v470_v22 = vpop.f32.mrf.mxu0 }
  0xd9   : > { %v962_v25 = vpop.f32.mrf.mxu1  ;;  %v499_v28 = vadd.f32 %v892_v26, %v470_v22  ;;  %v617_v58 = vadd.f32 %v959_v21, %v501_v49 }
  0xda   : > { %v952_v24 = vpop.f32.mrf.mxu0 }
  0xdb   : > { %v599_v29 = vpop.f32.mrf.mxu1  ;;  %v615_v35 = vadd.f32 %v586_v23, %v499_v28  ;;  %v504_v53 = vadd.f32 %v952_v24, %v892_v26 }
  0xdc   : > { %v483_v27 = vpop.f32.mrf.mxu0 }
  0xdd   : > { %v963_v32 = vpop.f32.mrf.mxu1  ;;  %v502_v59 = vadd.f32 %v892_v26, %v483_v27  ;;  %v620_v62 = vadd.f32 %v962_v25, %v504_v53 }
  0xde   : > { %v953_v30 = vpop.f32.mrf.mxu0 }
  0xdf   : > { %v505_v31 = vadd.f32 %v953_v30, %v892_v26  ;;  %v602_v37 = vpop.f32.mrf.mxu1  ;;  %v618_v1 = vadd.f32 %v599_v29, %v502_v59 }
  0xe0   : > { %v486_v33 = vpop.f32.mrf.mxu0 }
  0xe1   : > { %v621_v36 = vadd.f32 %v963_v32, %v505_v31  ;;  %v735_v41 = vpop.f32.mrf.mxu1  ;;  %v503_v45 = vadd.f32 %v892_v26, %v486_v33 }
  0xe2   : > { %v968_v38 = vpop.f32.mrf.mxu0 }
  0xe3   : > { %v742_v40 = vadd.f32 %v968_v38, %v615_v35  ;;  %v748_v42 = vadd.f32 %v735_v41, %v621_v36  ;;  %v978_v46 = vpop.f32.mrf.mxu1  ;;  %v619_v54 = vadd.f32 %v602_v37, %v503_v45 }
  0xe4   : > { %v667_v43 = vpop.f32.mrf.mxu0 }
  0xe5   : > { %751 = vst.msk [vmem:[%s1145_s24 + $0x8] sm:$0xff] %vm749_vm3, %v742_v40  ;;  %757 = vst.msk [vmem:[%s1145_s24 + $0x38] sm:$0xff] %vm749_vm3, %v748_v42  ;;  %v738_v51 = vpop.f32.mrf.mxu1 }
  0xe6   : > { %v969_v47 = vpop.f32.mrf.mxu0 }
  0xe7   : > { %v743_v50 = vadd.f32 %v969_v47, %v616_v44  ;;  %v979_v56 = vpop.f32.mrf.mxu1 }
  0xe8   : > { %v669_v52 = vpop.f32.mrf.mxu0 }
  0xe9   : > { %752 = vst.msk [vmem:[%s1145_s24 + $0x10] sm:$0xff] %vm749_vm3, %v743_v50  ;;  %v741_v55 = vadd.f32 %v669_v52, %v614_v48 }
  0xea   : > { %v972_v57 = vpop.f32.mrf.mxu0 }
  0xeb   : > { %750 = vst.msk [vmem:[%s1145_s24] sm:$0xff] %vm749_vm3, %v741_v55  ;;  %v746_v60 = vadd.f32 %v972_v57, %v619_v54 }
  0xec   : > { %v682_v61 = vpop.f32.mrf.mxu0 }
  0xed   : > { %755 = vst.msk [vmem:[%s1145_s24 + $0x28] sm:$0xff] %vm749_vm3, %v746_v60  ;;  %v744_v63 = vadd.f32 %v682_v61, %v617_v58 }
  0xee   : > { %v973_v0 = vpop.f32.mrf.mxu0 }
  0xef   : > { %753 = vst.msk [vmem:[%s1145_s24 + $0x18] sm:$0xff] %vm749_vm3, %v744_v63  ;;  %v747_v2 = vadd.f32 %v973_v0, %v620_v62 }
  0xf0   : > { %v685_v3 = vpop.f32.mrf.mxu0 }
  0xf1   : > { %756 = vst.msk [vmem:[%s1145_s24 + $0x30] sm:$0xff] %vm749_vm3, %v747_v2  ;;  %v745_v4 = vadd.f32 %v685_v3, %v618_v1 }
  0xf3   : > { %754 = vst.msk [vmem:[%s1145_s24 + $0x20] sm:$0xff] %vm749_vm3, %v745_v4 }
  0xf4 PF: > { %s15_s20 = sadd.s32 1, %s1045_s20   ;;  %s1178_s18 = smov %s1041_s19 }
  0xf5   : > { %p12_p5 = scmp.ge.s32.totalorder %s15_s20, 4   ;;  %s1179_s19 = smov %s1181_s21 }
  0xf7   :  { %14 = sbr.rel (!%p12_p5) target bundleno = 2 (0x2), region = 78 }

</bundles_post_ra>
